<compile_context>
chip_gen: v7x
topology: tpu7x:2x2x1
jax: 0.10.0
libtpu: 0.0.40
codegen_flags: <defaults>
</compile_context>

<pallas_src>
import jax
import jax.numpy as jnp
from jax.experimental import pallas as pl
from jax.experimental.pallas import tpu as pltpu

_LANES = 512        # lane width of the dense slab (multiple of 128)
_TILE_ROWS = 512    # rows per grid step (multiple of 8) -> 512*512*4B = 1 MiB tiles


def _fma_kernel(x_ref, w_ref, b_ref, o_ref):
    # Pure VPU elementwise fused multiply-add over a lane-dense tile.
    w = w_ref[0, 0]                      # scalar weight from SMEM
    b = b_ref[0, 0]                      # scalar bias from SMEM
    o_ref[...] = (x_ref[...] * w + b).astype(o_ref.dtype)


def linear_forward(x: jax.Array, weight: jax.Array, bias: jax.Array) -> jax.Array:
    """x: [N, 1], weight: [1, 1] (torch convention [out, in]), bias: [1]."""
    n, in_f = x.shape
    out_f = weight.shape[0]
    assert in_f == 1 and out_f == 1, "LinearRegressionV2 is nn.Linear(1, 1)"

    w2d = weight.reshape(1, 1).astype(x.dtype)
    b2d = bias.reshape(1, 1).astype(x.dtype)

    # --- lane-dense reshape: [N, 1] -> [rows, lanes] slab ------------------
    lanes = _LANES if n >= _LANES else 128
    rows = -(-n // lanes)                      # ceil(n / lanes)
    if rows >= _TILE_ROWS:
        tile_rows = _TILE_ROWS
        rows = -(-rows // tile_rows) * tile_rows   # pad rows to tile multiple
    else:
        tile_rows = rows                           # single block = full row extent

    padded = rows * lanes
    flat = x.reshape(-1)
    if padded != n:
        flat = jnp.pad(flat, (0, padded - n))
    slab = flat.reshape(rows, lanes)

    grid = (rows // tile_rows,)

    out = pl.pallas_call(
        _fma_kernel,
        out_shape=jax.ShapeDtypeStruct((rows, lanes), x.dtype),
        grid_spec=pltpu.PrefetchScalarGridSpec(
            num_scalar_prefetch=0,
            grid=grid,
            in_specs=[
                pl.BlockSpec((tile_rows, lanes), lambda i: (i, 0)),
                pl.BlockSpec(memory_space=pltpu.MemorySpace.SMEM),  # weight scalar
                pl.BlockSpec(memory_space=pltpu.MemorySpace.SMEM),  # bias scalar
            ],
            out_specs=pl.BlockSpec((tile_rows, lanes), lambda i: (i, 0)),
        ),
        compiler_params=pltpu.CompilerParams(
            dimension_semantics=("parallel",),
        ),
    )(slab, w2d, b2d)

    # Undo the lane-dense view + padding.
    return out.reshape(-1)[:n].reshape(n, out_f)


if __name__ == "__main__":
    # Deterministic parameters (shapes from nn.Linear(in_features=1, out_features=1)).
    weight = jnp.array([[0.7]], dtype=jnp.float32)   # [out_features, in_features]
    bias = jnp.array([0.3], dtype=jnp.float32)       # [out_features]

    key = jax.random.PRNGKey(0)

    # Small demo case (batch=8, feature=1) — single-block path.
    x_small = jax.random.normal(key, (8, 1), dtype=jnp.float32)
    y_small = linear_forward(x_small, weight, bias)
    jax.block_until_ready(y_small)
    ref_small = x_small @ weight.T + bias
    assert jnp.allclose(y_small, ref_small, atol=1e-6), (y_small, ref_small)

    # Larger ragged case — exercises the tiled, lane-dense, multi-step grid path.
    x_big = jax.random.normal(jax.random.PRNGKey(1), (300_037, 1), dtype=jnp.float32)
    y_big = linear_forward(x_big, weight, bias)
    jax.block_until_ready(y_big)
    ref_big = x_big @ weight.T + bias
    assert jnp.allclose(y_big, ref_big, atol=1e-6)

    print("KERNEL_OK")
</pallas_src>

<mosaic_0001>
module attributes {stable_mosaic.version = 11 : i64} {
  func.func @_fma_kernel(%arg0: i32, %arg1: memref<1x128xf32, #tpu.memory_space<vmem>>, %arg2: memref<1x1xf32, #tpu.memory_space<smem>>, %arg3: memref<1x1xf32, #tpu.memory_space<smem>>, %arg4: memref<1x128xf32, #tpu.memory_space<vmem>>) attributes {dimension_semantics = [#tpu.dimension_semantics<parallel>], iteration_bounds = array<i64: 1>, scalar_prefetch = 0 : i64, scratch_operands = 0 : i64, tpu.core_type = #tpu.core_type<tc>, window_params = [{transform_indices = @transform_0, window_bounds = array<i64: 1, 128>}, {transform_indices = @transform_1, window_bounds = array<i64: 1, 1>}, {transform_indices = @transform_2, window_bounds = array<i64: 1, 1>}, {transform_indices = @transform_3, window_bounds = array<i64: 1, 128>}]} {
    %c0 = arith.constant 0 : index
    %c0_0 = arith.constant 0 : index
    %0 = memref.load %arg2[%c0, %c0_0] : memref<1x1xf32, #tpu.memory_space<smem>>
    %c0_1 = arith.constant 0 : index
    %c0_2 = arith.constant 0 : index
    %1 = memref.load %arg3[%c0_1, %c0_2] : memref<1x1xf32, #tpu.memory_space<smem>>
    %c0_3 = arith.constant 0 : index
    %c0_4 = arith.constant 0 : index
    %2 = vector.load %arg1[%c0_3, %c0_4] : memref<1x128xf32, #tpu.memory_space<vmem>>, vector<1x128xf32>
    %3 = vector.broadcast %0 : f32 to vector<1x128xf32>
    %4 = arith.mulf %2, %3 : vector<1x128xf32>
    %5 = vector.broadcast %1 : f32 to vector<1x128xf32>
    %6 = arith.addf %4, %5 : vector<1x128xf32>
    %c0_5 = arith.constant 0 : index
    %c0_6 = arith.constant 0 : index
    %7 = vector.load %arg4[%c0_5, %c0_6] : memref<1x128xf32, #tpu.memory_space<vmem>>, vector<1x128xf32>
    tpu.vector_store %arg4[%c0_5, %c0_6], %6 {strides = array<i32>} : memref<1x128xf32, #tpu.memory_space<vmem>>, vector<1x128xf32>,
    return
  }
  func.func @transform_0(%arg0: i32) -> (i32, i32) {
    %c0_i32 = arith.constant 0 : i32
    %c0_i32_0 = arith.constant 0 : i32
    return %arg0, %c0_i32 : i32, i32
  }
  func.func @transform_1(%arg0: i32) -> (i32, i32) {
    %c0_i32 = arith.constant 0 : i32
    %c0_i32_0 = arith.constant 0 : i32
    %c0_i32_1 = arith.constant 0 : i32
    return %c0_i32, %c0_i32_0 : i32, i32
  }
  func.func @transform_2(%arg0: i32) -> (i32, i32) {
    %c0_i32 = arith.constant 0 : i32
    %c0_i32_0 = arith.constant 0 : i32
    %c0_i32_1 = arith.constant 0 : i32
    return %c0_i32, %c0_i32_0 : i32, i32
  }
  func.func @transform_3(%arg0: i32) -> (i32, i32) {
    %c0_i32 = arith.constant 0 : i32
    %c0_i32_0 = arith.constant 0 : i32
    return %arg0, %c0_i32 : i32, i32
  }
}

</mosaic_0001>

<bundles_post_ra>
// kernel: tpu_custom_call.1
= control target key start
LH: loop header
LB: loop body
LE: loop exit
PB: predicated region body
PF: predicated region fallthrough
CT: control target
= control target key end

     0   :  { %s106_s0 = inlined_call_operand.vmem [shape: f32[1,128], index: 0, kind: input, shape index: {}]   ;;  %s107_s1 = inlined_call_operand.<no memory space> [shape: f32[1,1], index: 1, kind: input, shape index: {}]   ;;  %s108_s2 = inlined_call_operand.<no memory space> [shape: f32[1,1], index: 2, kind: input, shape index: {}]   ;;  %s109_s3 = inlined_call_operand.hbm [shape: f32[1,128], index: 3, kind: output, shape index: {}]  }
   0x1   :  { %v19_v0 = vld [vmem:[%s106_s0] sm:$0x1]  ;;  %v20_v1 = vstv %s107_s1  ;;  %v22_v2 = vstv %s108_s2 }
   0x2   :  { %10 = vsyncpa [#allocation5], 0  ;;  %v21_v3 = vmul.f32 %v20_v1, %v19_v0  ;;  %s64_s18 = smov [#allocation4]  }
   0x3   :  { %s31_s19 = sshll.u32 %s64_s18, 4  ;;  %s32_s19 = int_to_ptr.vmem [resolvable:$true] %s31_s19 }
   0x4   :  { %v23_v4 = vadd.f32 %v22_v2, %v21_v3  ;;  %s40_s20 = scalar_lea.vmem %s32_s19, 16  ;;  %s44_s21 = scalar_lea.vmem %s32_s19, 32 }
   0x5   :  { %p41_p0 = scmp.ne.s32.totalorder %s32_s19, %s40_s20  ;;  %p45_p1 = scmp.lt.s32.totalorder %s32_s19, %s32_s19 }
   0x6   :  { %24 = vst [vmem:[#allocation4] sm:$0x1] %v23_v4  ;;  %p46_p2 = scmp.lt.s32.totalorder %s44_s21, %s40_s20 }
   0x8   :  { %p47_p3 = por %p46_p2, %p45_p1 }
   0xa   :  { %p48_p4 = pnand %p47_p3, %p41_p0 }
   0xc   :  { %51 = shalt.err (!%p48_p4)
}
   0xd   :  { %s52_s22 = scalar_lea.hbm %s109_s3, 16 }
   0xe   :  { %p53_p5 = scmp.ne.s32.totalorder %s109_s3, %s52_s22  ;;  %p56_p6 = scmp.lt.u32.totalorder %s52_s22, %s109_s3 }
  0x10   :  { %p58_p7 = pnand %p56_p6, %p53_p5 }
  0x12   :  { %61 = shalt.err (!%p58_p7)
}
  0x13   :  { %34 = dma.vmem_to_hbm [thread:$0]  %s32_s19, 16, %s109_s3, [#allocation5]  }
  0x14   :  { %62 = dma.done.wait [#allocation5], 16  }
  0x15   :  { %63 = vsyncadd [#allocation5], 4294967280 }
  0x16   :  { %38 = vsyncpa [#allocation5], 1 }

</bundles_post_ra>
